<compile_context>
chip_gen: v7x
topology: tpu7x:2x2x1
jax: 0.10.0
libtpu: 0.0.40
codegen_flags: <defaults>
</compile_context>

<pallas_src>
import jax
import jax.numpy as jnp
from jax.experimental import pallas as pl
from jax.experimental.pallas import tpu as pltpu


def _l2_joint_loss_kernel(hm_ref, gt_ref, vis_ref, coord_ref, out_ref):
    """One row tile: hm (R, DHW) native dtype; gt/vis (R, 3); coord (DHW, 128); out (1, 8, 128)."""
    hm = hm_ref[...].astype(jnp.float32)                    # (R, DHW), cast per-tile

    # Numerically-stable softmax numerator only; the denominator comes out of the matmul.
    m = jnp.max(hm, axis=1, keepdims=True)                  # (R, 1)
    e = jnp.exp(hm - m)                                     # (R, DHW)

    # coord columns: [x/W, y/H, z/D, 1, 0, ...]. One MXU pass yields the three
    # coordinate-weighted sums and sum(e) simultaneously.
    acc = jnp.dot(e, coord_ref[...], preferred_element_type=jnp.float32)  # (R, 128)
    s = acc[:, 3:4]                                         # sum(e) per row (exact divide below)
    pred = acc[:, 0:3] / s - 0.5                            # (R, 3), per-joint (x, y, z)

    diff = pred - gt_ref[...].astype(jnp.float32)
    partial = jnp.sum(diff * diff * vis_ref[...].astype(jnp.float32))

    # Lane-dense per-step partial sum; reduced (and /B'd) in the wrapper.
    out_ref[...] = jnp.zeros_like(out_ref) + partial


def l2_joint_location_loss(preds, gt_joints, gt_joints_vis, *, output_3d=True,
                           size_average=True):
    """Pallas implementation of L2JointLocationLoss.forward."""
    assert output_3d, "Not Implemented!"
    B, J, D, H, W = preds.shape
    num_joints = gt_joints_vis.shape[1] // 3
    assert num_joints == J, "gt_joints_vis implies a different number of joints"

    dhw = D * H * W
    rows = B * J
    itemsize = jnp.dtype(preds.dtype).itemsize

    # Lane-dense flatten; keep the native dtype (no f32 copy in HBM).
    hm = preds.reshape(rows, dhw)
    gt = gt_joints.reshape(rows, 3).astype(jnp.float32)
    vis = gt_joints_vis.reshape(rows, 3).astype(jnp.float32)

    # Coordinate matrix: columns 0..3 = (x/W, y/H, z/D, 1), zero-padded to 128 lanes
    # so the MXU RHS is tile-aligned. Constant block index -> loaded into VMEM once.
    idx = jnp.arange(dhw, dtype=jnp.int32)
    cx = (idx % W).astype(jnp.float32) / float(W)
    cy = ((idx // W) % H).astype(jnp.float32) / float(H)
    cz = (idx // (W * H)).astype(jnp.float32) / float(D)
    coord = jnp.zeros((dhw, 128), jnp.float32)
    coord = coord.at[:, 0].set(cx).at[:, 1].set(cy).at[:, 2].set(cz)
    coord = coord.at[:, 3].set(1.0)
    # TODO(synk): for very large volumes (e.g. 64^3) the DHW axis itself should be
    # tiled with an online-softmax accumulation; not needed at these sizes.

    # Row-tile knob: target ~2 MiB input block so per-step overhead is amortized and
    # 2x block + f32 temps fit every generation's VMEM (v7x 64 MiB included).
    target_bytes = 2 * 1024 * 1024
    r = max(1, target_bytes // (dhw * itemsize))
    r = max(8, min(1024, (r // 8) * 8))
    if rows <= r:
        r = rows                       # full-extent block: any row count is legal
        pad = 0
    else:
        pad = (-rows) % r
        if pad:
            # padded rows: zero heatmap (uniform softmax, finite) and zero vis -> 0 loss
            hm = jnp.pad(hm, ((0, pad), (0, 0)))
            gt = jnp.pad(gt, ((0, pad), (0, 0)))
            vis = jnp.pad(vis, ((0, pad), (0, 0)))
    padded_rows = rows + pad
    grid = padded_rows // r

    # VMEM budget: double-buffered input block + f32 temps (hm, e) + coord buffers.
    est = 2 * r * dhw * itemsize + 2 * r * dhw * 4 + 2 * dhw * 128 * 4 + (1 << 20)
    vmem_limit = int(min(100 * 1024 * 1024, max(32 * 1024 * 1024, est)))

    cost = pl.CostEstimate(
        flops=int(padded_rows * dhw * (2 * 128 + 4)),
        transcendentals=int(padded_rows * dhw),
        bytes_accessed=int(hm.size * itemsize + coord.size * 4
                           + (gt.size + vis.size) * 4 + grid * 8 * 128 * 4),
    )

    out = pl.pallas_call(
        _l2_joint_loss_kernel,
        out_shape=jax.ShapeDtypeStruct((grid, 8, 128), jnp.float32),
        grid_spec=pltpu.PrefetchScalarGridSpec(
            num_scalar_prefetch=0,
            grid=(grid,),
            in_specs=[
                pl.BlockSpec((r, dhw), lambda g: (g, 0)),       # heatmap row tile
                pl.BlockSpec((r, 3), lambda g: (g, 0)),         # gt rows
                pl.BlockSpec((r, 3), lambda g: (g, 0)),         # vis rows
                pl.BlockSpec((dhw, 128), lambda g: (0, 0)),     # coord matrix (resident)
            ],
            out_specs=pl.BlockSpec((1, 8, 128), lambda g: (g, 0, 0)),
        ),
        compiler_params=pltpu.CompilerParams(
            dimension_semantics=("parallel",),                   # megacore-able on v7x
            vmem_limit_bytes=vmem_limit),
        cost_estimate=cost,
    )(hm, gt, vis, coord)

    total = jnp.sum(out[:, 0, 0])
    return total / float(B) if size_average else total


def _reference(preds, gt_joints, gt_joints_vis, size_average=True):
    """Pure-JAX mirror of the PyTorch module, for correctness checking."""
    B, J, D, H, W = preds.shape
    p = jax.nn.softmax(preds.astype(jnp.float32).reshape(B, J, -1), axis=2)
    p = p.reshape(B, J, D, H, W)
    x = jnp.sum(jnp.sum(p, axis=(2, 3)) * jnp.arange(W, dtype=jnp.float32), axis=2) / W - 0.5
    y = jnp.sum(jnp.sum(p, axis=(2, 4)) * jnp.arange(H, dtype=jnp.float32), axis=2) / H - 0.5
    z = jnp.sum(jnp.sum(p, axis=(3, 4)) * jnp.arange(D, dtype=jnp.float32), axis=2) / D - 0.5
    pred = jnp.stack([x, y, z], axis=2).reshape(B, J * 3)
    out = (pred - gt_joints) ** 2 * gt_joints_vis
    total = out.sum()
    return total / B if size_average else total


if __name__ == "__main__":
    B, J, D, H, W = 2, 4, 8, 16, 16

    key = jax.random.PRNGKey(0)
    k1, k2, k3 = jax.random.split(key, 3)
    preds = jax.random.normal(k1, (B, J, D, H, W), dtype=jnp.float32)
    gt_joints = 0.5 * jax.random.normal(k2, (B, J * 3), dtype=jnp.float32)
    gt_joints_vis = jax.random.bernoulli(k3, 0.8, (B, J * 3)).astype(jnp.float32)

    loss = l2_joint_location_loss(preds, gt_joints, gt_joints_vis,
                                  output_3d=True, size_average=True)
    loss = jax.block_until_ready(loss)
    ref = _reference(preds, gt_joints, gt_joints_vis, size_average=True)
    # Tolerance covers MXU f32 multi-pass accumulation differences while still
    # catching any semantic error (those would be O(1e-1) or larger).
    assert jnp.allclose(loss, ref, rtol=2e-3, atol=1e-4), (loss, ref)

    loss_sum = l2_joint_location_loss(preds, gt_joints, gt_joints_vis,
                                      output_3d=True, size_average=False)
    loss_sum = jax.block_until_ready(loss_sum)
    ref_sum = _reference(preds, gt_joints, gt_joints_vis, size_average=False)
    assert jnp.allclose(loss_sum, ref_sum, rtol=2e-3, atol=1e-4), (loss_sum, ref_sum)

    print("KERNEL_OK")
</pallas_src>

<mosaic_0001>
module attributes {stable_mosaic.version = 11 : i64} {
  func.func @_l2_joint_loss_kernel(%arg0: i32, %arg1: memref<8x2048xf32, #tpu.memory_space<vmem>>, %arg2: memref<8x3xf32, #tpu.memory_space<vmem>>, %arg3: memref<8x3xf32, #tpu.memory_space<vmem>>, %arg4: memref<2048x128xf32, #tpu.memory_space<vmem>>, %arg5: memref<1x8x128xf32, #tpu.memory_space<vmem>>) attributes {dimension_semantics = [#tpu.dimension_semantics<parallel>], iteration_bounds = array<i64: 1>, scalar_prefetch = 0 : i64, scratch_operands = 0 : i64, tpu.core_type = #tpu.core_type<tc>, window_params = [{transform_indices = @transform_0, window_bounds = array<i64: 8, 2048>}, {transform_indices = @transform_1, window_bounds = array<i64: 8, 3>}, {transform_indices = @transform_2, window_bounds = array<i64: 8, 3>}, {pipeline_mode = #tpu.pipeline_mode<synchronous>, transform_indices = @transform_3, window_bounds = array<i64: 2048, 128>}, {transform_indices = @transform_4, window_bounds = array<i64: 1, 8, 128>}]} {
    %c0 = arith.constant 0 : index
    %c0_0 = arith.constant 0 : index
    %0 = vector.load %arg1[%c0, %c0_0] : memref<8x2048xf32, #tpu.memory_space<vmem>>, vector<8x2048xf32>
    %cst = arith.constant dense<0xFF800000> : vector<8xf32>
    %1 = vector.multi_reduction <maximumf>, %0, %cst [1] : vector<8x2048xf32> to vector<8xf32>
    %2 = vector.shape_cast %1 : vector<8xf32> to vector<8x1xf32>
    %3 = vector.broadcast %2 : vector<8x1xf32> to vector<8x2048xf32>
    %4 = arith.subf %0, %3 : vector<8x2048xf32>
    %5 = math.exp %4 : vector<8x2048xf32>
    %c0_1 = arith.constant 0 : index
    %c0_2 = arith.constant 0 : index
    %6 = vector.load %arg4[%c0_1, %c0_2] : memref<2048x128xf32, #tpu.memory_space<vmem>>, vector<2048x128xf32>
    %cst_3 = arith.constant dense<0.000000e+00> : vector<8x128xf32>
    %7 = tpu.matmul %5, %6, %cst_3 {dimension_numbers = #tpu.dot_dimension_numbers<[1], [0], [0], [1], [0, 0, 1, 1], [], []>} : vector<8x2048xf32>, vector<2048x128xf32>, vector<8x128xf32> -> vector<8x128xf32>
    %8 = vector.extract_strided_slice %7 {offsets = [0, 3], sizes = [8, 1], strides = [1, 1]} : vector<8x128xf32> to vector<8x1xf32>
    %9 = vector.extract_strided_slice %7 {offsets = [0, 0], sizes = [8, 3], strides = [1, 1]} : vector<8x128xf32> to vector<8x3xf32>
    %10 = vector.broadcast %8 : vector<8x1xf32> to vector<8x3xf32>
    %11 = arith.divf %9, %10 : vector<8x3xf32>
    %cst_4 = arith.constant 5.000000e-01 : f32
    %12 = vector.broadcast %cst_4 : f32 to vector<8x3xf32>
    %13 = arith.subf %11, %12 : vector<8x3xf32>
    %c0_5 = arith.constant 0 : index
    %c0_6 = arith.constant 0 : index
    %14 = vector.load %arg2[%c0_5, %c0_6] : memref<8x3xf32, #tpu.memory_space<vmem>>, vector<8x3xf32>
    %15 = arith.subf %13, %14 : vector<8x3xf32>
    %16 = arith.mulf %15, %15 : vector<8x3xf32>
    %c0_7 = arith.constant 0 : index
    %c0_8 = arith.constant 0 : index
    %17 = vector.load %arg3[%c0_7, %c0_8] : memref<8x3xf32, #tpu.memory_space<vmem>>, vector<8x3xf32>
    %18 = arith.mulf %16, %17 : vector<8x3xf32>
    %19 = vector.shape_cast %18 : vector<8x3xf32> to vector<1x8x3xf32>
    %cst_9 = arith.constant dense<0.000000e+00> : vector<1xf32>
    %20 = vector.multi_reduction <add>, %19, %cst_9 [1, 2] : vector<1x8x3xf32> to vector<1xf32>
    %21 = vector.shape_cast %20 : vector<1xf32> to vector<1x1x1xf32>
    %22 = vector.extract %21[0, 0, 0] : f32 from vector<1x1x1xf32>
    %cst_10 = arith.constant 0.000000e+00 : f32
    %23 = vector.broadcast %cst_10 : f32 to vector<1x8x128xf32>
    %24 = vector.broadcast %22 : f32 to vector<1x8x128xf32>
    %25 = arith.addf %23, %24 : vector<1x8x128xf32>
    %c0_11 = arith.constant 0 : index
    %c0_12 = arith.constant 0 : index
    %c0_13 = arith.constant 0 : index
    %26 = vector.load %arg5[%c0_11, %c0_12, %c0_13] : memref<1x8x128xf32, #tpu.memory_space<vmem>>, vector<1x8x128xf32>
    tpu.vector_store %arg5[%c0_11, %c0_12, %c0_13], %25 {strides = array<i32>} : memref<1x8x128xf32, #tpu.memory_space<vmem>>, vector<1x8x128xf32>,
    return
  }
  func.func @transform_0(%arg0: i32) -> (i32, i32) {
    %c0_i32 = arith.constant 0 : i32
    %c0_i32_0 = arith.constant 0 : i32
    return %arg0, %c0_i32 : i32, i32
  }
  func.func @transform_1(%arg0: i32) -> (i32, i32) {
    %c0_i32 = arith.constant 0 : i32
    %c0_i32_0 = arith.constant 0 : i32
    return %arg0, %c0_i32 : i32, i32
  }
  func.func @transform_2(%arg0: i32) -> (i32, i32) {
    %c0_i32 = arith.constant 0 : i32
    %c0_i32_0 = arith.constant 0 : i32
    return %arg0, %c0_i32 : i32, i32
  }
  func.func @transform_3(%arg0: i32) -> (i32, i32) {
    %c0_i32 = arith.constant 0 : i32
    %c0_i32_0 = arith.constant 0 : i32
    %c0_i32_1 = arith.constant 0 : i32
    return %c0_i32, %c0_i32_0 : i32, i32
  }
  func.func @transform_4(%arg0: i32) -> (i32, i32, i32) {
    %c0_i32 = arith.constant 0 : i32
    %c0_i32_0 = arith.constant 0 : i32
    %c0_i32_1 = arith.constant 0 : i32
    return %arg0, %c0_i32, %c0_i32_0 : i32, i32, i32
  }
}

</mosaic_0001>

<bundles_post_ra>
// kernel: tpu_custom_call.1
= control target key start
LH: loop header
LB: loop body
LE: loop exit
PB: predicated region body
PF: predicated region fallthrough
CT: control target
= control target key end

     0   :  { %9 = vsyncpa [#allocation3], 0  ;;  %s1792_s0 = inlined_call_operand.hbm [shape: f32[8,2048], index: 0, kind: input, shape index: {}]   ;;  %s1793_s1 = inlined_call_operand.vmem [shape: f32[8,3], index: 1, kind: input, shape index: {}]   ;;  %s1794_s2 = inlined_call_operand.vmem [shape: f32[8,3], index: 2, kind: input, shape index: {}]   ;;  %s1795_s3 = inlined_call_operand.hbm [shape: f32[2048,128], index: 3, kind: input, shape index: {}]   ;;  %s1796_s4 = inlined_call_operand.hbm [shape: f32[1,8,128], index: 4, kind: output, shape index: {}]  }
   0x1   :  { %10 = vsyncpa [#allocation6], 0 }
   0x2   :  { %11 = vsyncpa [#allocation4], 0  ;;  %s1638_s15 = smov [#allocation2]   ;;  %s1639_s17 = smov [#allocation5]  }
   0x3   :  { %s18_s16 = sshll.u32 %s1638_s15, 4  ;;  %s31_s18 = sshll.u32 %s1639_s17, 4  ;;  %s19_s16 = int_to_ptr.vmem [resolvable:$true] %s18_s16  ;;  %s1669_s18 = int_to_ptr.vmem [resolvable:$true] %s31_s18 }
   0x4   :  { %s1566_s21 = scalar_lea.hbm %s1792_s0, 2048 }
   0x5   :  { %p1567_p0 = scmp.ne.s32.totalorder %s1792_s0, %s1566_s21  ;;  %p1570_p1 = scmp.lt.u32.totalorder %s1566_s21, %s1792_s0 }
   0x7   :  { %p1572_p2 = pnand %p1570_p1, %p1567_p0 }
   0x9   :  { %1575 = shalt.err (!%p1572_p2)
}
   0xa   :  { %s1576_s26 = scalar_lea.vmem %s19_s16, 2048  ;;  %p1581_p4 = scmp.lt.s32.totalorder %s19_s16, %s19_s16 }
   0xb   :  { %p1577_p3 = scmp.ne.s32.totalorder %s19_s16, %s1576_s26  ;;  %p1582_p5 = scmp.lt.s32.totalorder %s1576_s26, %s1576_s26 }
   0xd   :  { %p1583_p6 = por %p1582_p5, %p1581_p4 }
   0xf   :  { %p1584_p7 = pnand %p1583_p6, %p1577_p3 }
  0x11   :  { %1587 = shalt.err (!%p1584_p7)
}
  0x12   :  { %21 = dma.hbm_to_vmem [thread:$0]  %s1792_s0, 2048, %s19_s16, [#allocation3]  }
  0x13   :  { %s1588_s5 = scalar_lea.hbm %s1795_s3, 32768 }
  0x14   :  { %p1589_p8 = scmp.ne.s32.totalorder %s1795_s3, %s1588_s5  ;;  %p1592_p9 = scmp.lt.u32.totalorder %s1588_s5, %s1795_s3 }
  0x16   :  { %p1594_p10 = pnand %p1592_p9, %p1589_p8 }
  0x18   :  { %1597 = shalt.err (!%p1594_p10)
}
  0x19   :  { %s1598_s10 = scalar_lea.vmem %s1669_s18, 32768  ;;  %p1603_p12 = scmp.lt.s32.totalorder %s1669_s18, %s1669_s18 }
  0x1a   :  { %p1599_p11 = scmp.ne.s32.totalorder %s1669_s18, %s1598_s10  ;;  %p1604_p13 = scmp.lt.s32.totalorder %s1598_s10, %s1598_s10 }
  0x1c   :  { %p1605_p0 = por %p1604_p13, %p1603_p12 }
  0x1e   :  { %p1606_p1 = pnand %p1605_p0, %p1599_p11 }
  0x20   :  { %1609 = shalt.err (!%p1606_p1)
}
  0x21   :  { %s1640_s0 = smov 128   ;;  %s1641_s11 = smov 8  }
  0x22   :  { %37 = dma.hbm_to_vmem [thread:$0]  %s1795_s3, 32768, %s1669_s18, [#allocation6], %s1640_s0, %s1640_s0, %s1641_s11  }
  0x23   :  { %1632 = dma.done.wait [#allocation3], 2048  }
  0x24   :  { %1633 = vsyncadd [#allocation3], 4294965248 }
  0x25   :  { %1634 = dma.done.wait [#allocation6], 32768  }
  0x26   :  { %1635 = vsyncadd [#allocation6], 4294934528  ;;  %v1700_v0 = vld [vmem:[#allocation2] sm:$0xff]  ;;  %v1702_v1 = vld [vmem:[#allocation2 + $0x8] sm:$0xff]  ;;  %vm954_vm0 = vcmask 23552  }
  0x27   :  { %v1704_v2 = vld [vmem:[#allocation2 + $0x10] sm:$0xff]  ;;  %v1706_v3 = vld [vmem:[#allocation2 + $0x18] sm:$0xff]  ;;  %v1708_v4 = vld [vmem:[#allocation2 + $0x20] sm:$0xff] }
  0x28   :  { %v1710_v5 = vld [vmem:[#allocation2 + $0x28] sm:$0xff]  ;;  %v1712_v6 = vld [vmem:[#allocation2 + $0x30] sm:$0xff]  ;;  %v1714_v7 = vld [vmem:[#allocation2 + $0x38] sm:$0xff]  ;;  %v60_v9 = vmax.f32 %v1700_v0, %v1708_v4 }
  0x29   :  { %v1716_v8 = vld [vmem:[#allocation2 + $0x40] sm:$0xff]  ;;  %v61_v10 = vmax.f32 %v1702_v1, %v1710_v5  ;;  %v1722_v11 = vld [vmem:[#allocation2 + $0x48] sm:$0xff]  ;;  %v1724_v12 = vld [vmem:[#allocation2 + $0x50] sm:$0xff]  ;;  %v62_v14 = vmax.f32 %v1704_v2, %v1712_v6  ;;  %v63_v15 = vmax.f32 %v1706_v3, %v1714_v7 }
  0x2a   :  { %v1726_v13 = vld [vmem:[#allocation2 + $0x58] sm:$0xff]  ;;  %v56_v16 = vld [vmem:[#allocation2 + $0x60] sm:$0xff]  ;;  %v1732_v17 = vld [vmem:[#allocation2 + $0x68] sm:$0xff]  ;;  %v64_v19 = vmax.f32 %v60_v9, %v1716_v8 }
  0x2b   :  { %v58_v18 = vld [vmem:[#allocation2 + $0x70] sm:$0xff]  ;;  %v65_v20 = vmax.f32 %v61_v10, %v1722_v11  ;;  %v1736_v21 = vld [vmem:[#allocation2 + $0x78] sm:$0xff]  ;;  %v66_v22 = vmax.f32 %v62_v14, %v1724_v12  ;;  %v67_v23 = vmax.f32 %v63_v15, %v1726_v13  ;;  %v141_v24 = vld [vmem:[#allocation5 + $0x80] sm:$0xff] }
  0x2c   :  { %v142_v25 = vld [vmem:[#allocation5 + $0x88] sm:$0xff]  ;;  %v68_v26 = vmax.f32 %v64_v19, %v56_v16  ;;  %v173_v29 = vld [vmem:[#allocation5 + $0x180] sm:$0xff]  ;;  %v143_v41 = vld [vmem:[#allocation5 + $0x90] sm:$0xff] }
  0x2d   :  { %v69_v27 = vmax.f32 %v65_v20, %v1732_v17  ;;  %v1265_v28 = vpack.c.bf16 %v142_v25, %v141_v24  ;;  %v174_v30 = vld [vmem:[#allocation5 + $0x188] sm:$0xff]  ;;  %v125_v31 = vld [vmem:[#allocation5] sm:$0xff]  ;;  %v70_v32 = vmax.f32 %v66_v22, %v58_v18  ;;  %v71_v33 = vmax.f32 %v67_v23, %v1736_v21  ;;  %v144_v42 = vld [vmem:[#allocation5 + $0x98] sm:$0xff] }
  0x2e   :  { %v1297_v34 = vpack.c.bf16 %v174_v30, %v173_v29  ;;  %v126_v35 = vld [vmem:[#allocation5 + $0x8] sm:$0xff]  ;;  %v157_v36 = vld [vmem:[#allocation5 + $0x100] sm:$0xff]  ;;  %v175_v43 = vld [vmem:[#allocation5 + $0x190] sm:$0xff]  ;;  %v1269_v45 = vpack.c.bf16 %v144_v42, %v143_v41 }
  0x2f   :  { %v158_v37 = vld [vmem:[#allocation5 + $0x108] sm:$0xff]  ;;  %v72_v38 = vmax.f32 %v68_v26, %v69_v27  ;;  %1266 = vmatprep.subr.bf16.mxu0 %v1265_v28  ;;  %v1267_v39 = vpack.c.bf16 %v126_v35, %v125_v31  ;;  %v73_v44 = vmax.f32 %v70_v32, %v71_v33  ;;  %v176_v46 = vld [vmem:[#allocation5 + $0x198] sm:$0xff]  ;;  %v127_v47 = vld [vmem:[#allocation5 + $0x10] sm:$0xff] }
  0x30   :  { %v1299_v40 = vpack.c.bf16 %v158_v37, %v157_v36  ;;  %1298 = vmatprep.subr.bf16.mxu1 %v1297_v34  ;;  %v128_v48 = vld [vmem:[#allocation5 + $0x18] sm:$0xff]  ;;  %v1301_v49 = vpack.c.bf16 %v176_v46, %v175_v43  ;;  %v159_v51 = vld [vmem:[#allocation5 + $0x110] sm:$0xff]  ;;  %v145_v53 = vld [vmem:[#allocation5 + $0xa0] sm:$0xff] }
  0x31   :  { %1268 = vmatpush3.bf16.msra.mxu0 %v1267_v39  ;;  %v1271_v50 = vpack.c.bf16 %v128_v48, %v127_v47  ;;  %v160_v52 = vld [vmem:[#allocation5 + $0x118] sm:$0xff]  ;;  %v74_v54 = vmax.f32 %v72_v38, %v73_v44  ;;  %v146_v56 = vld [vmem:[#allocation5 + $0xa8] sm:$0xff]  ;;  %v177_v57 = vld [vmem:[#allocation5 + $0x1a0] sm:$0xff] }
  0x32   :  { %1300 = vmatpush3.bf16.msra.mxu1 %v1299_v40  ;;  %1270 = vmatprep.subr.bf16.mxu0 %v1269_v45  ;;  %v1303_v55 = vpack.c.bf16 %v160_v52, %v159_v51  ;;  %v178_v58 = vld [vmem:[#allocation5 + $0x1a8] sm:$0xff]  ;;  %v1273_v59 = vpack.c.bf16 %v146_v56, %v145_v53  ;;  %v129_v61 = vld [vmem:[#allocation5 + $0x20] sm:$0xff]  ;;  %v147_v10 = vld [vmem:[#allocation5 + $0xb0] sm:$0xff] }
  0x33   :  { %1302 = vmatprep.subr.bf16.mxu1 %v1301_v49  ;;  %v1305_v60 = vpack.c.bf16 %v178_v58, %v177_v57  ;;  %v130_v62 = vld [vmem:[#allocation5 + $0x28] sm:$0xff]  ;;  %v161_v63 = vld [vmem:[#allocation5 + $0x120] sm:$0xff]  ;;  %75 = vmax.xlane.f32.xlu0 %v74_v54  ;;  %v148_v14 = vld [vmem:[#allocation5 + $0xb8] sm:$0xff] }
  0x34   :  { %v162_v9 = vld [vmem:[#allocation5 + $0x128] sm:$0xff]  ;;  %v1275_v15 = vpack.c.bf16 %v130_v62, %v129_v61  ;;  %v179_v18 = vld [vmem:[#allocation5 + $0x1b0] sm:$0xff]  ;;  %v180_v19 = vld [vmem:[#allocation5 + $0x1b8] sm:$0xff]  ;;  %v1277_v22 = vpack.c.bf16 %v148_v14, %v147_v10 }
  0x35   :  { %1272 = vmatpush3.bf16.msra.mxu0 %v1271_v50  ;;  %v1307_v16 = vpack.c.bf16 %v162_v9, %v161_v63  ;;  %v131_v20 = vld [vmem:[#allocation5 + $0x30] sm:$0xff]  ;;  %v1309_v23 = vpack.c.bf16 %v180_v19, %v179_v18  ;;  %v132_v24 = vld [vmem:[#allocation5 + $0x38] sm:$0xff]  ;;  %v149_v27 = vld [vmem:[#allocation5 + $0xc0] sm:$0xff] }
  0x36   :  { %1304 = vmatpush3.bf16.msra.mxu1 %v1303_v55  ;;  %1274 = vmatprep.subr.bf16.mxu0 %v1273_v59  ;;  %v163_v25 = vld [vmem:[#allocation5 + $0x130] sm:$0xff]  ;;  %v164_v26 = vld [vmem:[#allocation5 + $0x138] sm:$0xff]  ;;  %v150_v28 = vld [vmem:[#allocation5 + $0xc8] sm:$0xff]  ;;  %v1279_v31 = vpack.c.bf16 %v132_v24, %v131_v20 }
  0x37   :  { %1306 = vmatprep.subr.bf16.mxu1 %v1305_v60  ;;  %v181_v29 = vld [vmem:[#allocation5 + $0x1c0] sm:$0xff]  ;;  %v182_v30 = vld [vmem:[#allocation5 + $0x1c8] sm:$0xff]  ;;  %v1311_v32 = vpack.c.bf16 %v164_v26, %v163_v25  ;;  %v1281_v33 = vpack.c.bf16 %v150_v28, %v149_v27  ;;  %v151_v41 = vld [vmem:[#allocation5 + $0xd0] sm:$0xff] }
  0x38   :  { %v1313_v34 = vpack.c.bf16 %v182_v30, %v181_v29  ;;  %v133_v35 = vld [vmem:[#allocation5 + $0x40] sm:$0xff]  ;;  %v134_v36 = vld [vmem:[#allocation5 + $0x48] sm:$0xff]  ;;  %v152_v42 = vld [vmem:[#allocation5 + $0xd8] sm:$0xff] }
  0x39   :  { %1276 = vmatpush3.bf16.msra.mxu0 %v1275_v15  ;;  %v165_v37 = vld [vmem:[#allocation5 + $0x140] sm:$0xff]  ;;  %v1283_v38 = vpack.c.bf16 %v134_v36, %v133_v35  ;;  %v166_v39 = vld [vmem:[#allocation5 + $0x148] sm:$0xff]  ;;  %v183_v43 = vld [vmem:[#allocation5 + $0x1d0] sm:$0xff]  ;;  %v1285_v44 = vpack.c.bf16 %v152_v42, %v151_v41 }
  0x3a   :  { %1308 = vmatpush3.bf16.msra.mxu1 %v1307_v16  ;;  %1278 = vmatprep.subr.bf16.mxu0 %v1277_v22  ;;  %v1315_v40 = vpack.c.bf16 %v166_v39, %v165_v37  ;;  %v184_v45 = vld [vmem:[#allocation5 + $0x1d8] sm:$0xff]  ;;  %v135_v46 = vld [vmem:[#allocation5 + $0x50] sm:$0xff]  ;;  %v153_v52 = vld [vmem:[#allocation5 + $0xe0] sm:$0xff] }
  0x3b   :  { %1310 = vmatprep.subr.bf16.mxu1 %v1309_v23  ;;  %v136_v47 = vld [vmem:[#allocation5 + $0x58] sm:$0xff]  ;;  %v1317_v48 = vpack.c.bf16 %v184_v45, %v183_v43  ;;  %v167_v50 = vld [vmem:[#allocation5 + $0x150] sm:$0xff]  ;;  %v154_v54 = vld [vmem:[#allocation5 + $0xe8] sm:$0xff] }
  0x3c   :  { %v1287_v49 = vpack.c.bf16 %v136_v47, %v135_v46  ;;  %v168_v51 = vld [vmem:[#allocation5 + $0x158] sm:$0xff]  ;;  %v185_v55 = vld [vmem:[#allocation5 + $0x1e0] sm:$0xff]  ;;  %v186_v56 = vld [vmem:[#allocation5 + $0x1e8] sm:$0xff]  ;;  %v1289_v57 = vpack.c.bf16 %v154_v54, %v153_v52 }
  0x3d   :  { %1280 = vmatpush3.bf16.msra.mxu0 %v1279_v31  ;;  %v1319_v53 = vpack.c.bf16 %v168_v51, %v167_v50  ;;  %v1321_v58 = vpack.c.bf16 %v186_v56, %v185_v55  ;;  %v137_v59 = vld [vmem:[#allocation5 + $0x60] sm:$0xff]  ;;  %v138_v60 = vld [vmem:[#allocation5 + $0x68] sm:$0xff]  ;;  %v155_v9 = vld [vmem:[#allocation5 + $0xf0] sm:$0xff] }
  0x3e   :  { %1312 = vmatpush3.bf16.msra.mxu1 %v1311_v32  ;;  %1282 = vmatprep.subr.bf16.mxu0 %v1281_v33  ;;  %v169_v61 = vld [vmem:[#allocation5 + $0x160] sm:$0xff]  ;;  %v1291_v62 = vpack.c.bf16 %v138_v60, %v137_v59  ;;  %v170_v63 = vld [vmem:[#allocation5 + $0x168] sm:$0xff]  ;;  %v156_v10 = vld [vmem:[#allocation5 + $0xf8] sm:$0xff] }
  0x3f   :  { %1314 = vmatprep.subr.bf16.mxu1 %v1313_v34  ;;  %v1323_v14 = vpack.c.bf16 %v170_v63, %v169_v61  ;;  %v1293_v15 = vpack.c.bf16 %v156_v10, %v155_v9  ;;  %v187_v16 = vld [vmem:[#allocation5 + $0x1f0] sm:$0xff]  ;;  %v188_v18 = vld [vmem:[#allocation5 + $0x1f8] sm:$0xff]  ;;  %v205_v27 = vld [vmem:[#allocation5 + $0x280] sm:$0xff] }
  0x40   :  { %v139_v19 = vld [vmem:[#allocation5 + $0x70] sm:$0xff]  ;;  %v1325_v20 = vpack.c.bf16 %v188_v18, %v187_v16  ;;  %v140_v22 = vld [vmem:[#allocation5 + $0x78] sm:$0xff]  ;;  %v206_v28 = vld [vmem:[#allocation5 + $0x288] sm:$0xff] }
  0x41   :  { %1284 = vmatpush3.bf16.msra.mxu0 %v1283_v38  ;;  %v171_v23 = vld [vmem:[#allocation5 + $0x170] sm:$0xff]  ;;  %v172_v24 = vld [vmem:[#allocation5 + $0x178] sm:$0xff]  ;;  %v1295_v25 = vpack.c.bf16 %v140_v22, %v139_v19  ;;  %v237_v29 = vld [vmem:[#allocation5 + $0x380] sm:$0xff]  ;;  %v1329_v30 = vpack.c.bf16 %v206_v28, %v205_v27 }
  0x42   :  { %1316 = vmatpush3.bf16.msra.mxu1 %v1315_v40  ;;  %1286 = vmatprep.subr.bf16.mxu0 %v1285_v44  ;;  %v1327_v26 = vpack.c.bf16 %v172_v24, %v171_v23  ;;  %v238_v31 = vld [vmem:[#allocation5 + $0x388] sm:$0xff]  ;;  %v221_v44 = vld [vmem:[#allocation5 + $0x300] sm:$0xff]  ;;  %v208_v46 = vld [vmem:[#allocation5 + $0x298] sm:$0xff] }
  0x43   :  { %1318 = vmatprep.subr.bf16.mxu1 %v1317_v48  ;;  %v1361_v32 = vpack.c.bf16 %v238_v31, %v237_v29  ;;  %v222_v45 = vld [vmem:[#allocation5 + $0x308] sm:$0xff]  ;;  %v239_v48 = vld [vmem:[#allocation5 + $0x390] sm:$0xff]  ;;  %v193_v18 = vld [vmem:[#allocation5 + $0x220] sm:$0xff] }
  0x44   :  { %v1363_v51 = vpack.c.bf16 %v222_v45, %v221_v44  ;;  %v191_v52 = vld [vmem:[#allocation5 + $0x210] sm:$0xff]  ;;  %v210_v59 = vld [vmem:[#allocation5 + $0x2a8] sm:$0xff]  ;;  %v244_v27 = vld [vmem:[#allocation5 + $0x3b8] sm:$0xff] }
  0x45   :  { %1288 = vmatpush3.bf16.msra.mxu0 %v1287_v49  ;;  %v240_v49 = vld [vmem:[#allocation5 + $0x398] sm:$0xff]  ;;  %v223_v54 = vld [vmem:[#allocation5 + $0x310] sm:$0xff]  ;;  %v242_v63 = vld [vmem:[#allocation5 + $0x3a8] sm:$0xff] }
  0x46   :  { %1320 = vmatpush3.bf16.msra.mxu1 %v1319_v53  ;;  %1290 = vmatprep.subr.bf16.mxu0 %v1289_v57  ;;  %v192_v53 = vld [vmem:[#allocation5 + $0x218] sm:$0xff]  ;;  %v1365_v61 = vpack.c.bf16 %v240_v49, %v239_v48  ;;  %v194_v19 = vld [vmem:[#allocation5 + $0x228] sm:$0xff]  ;;  %v211_v24 = vld [vmem:[#allocation5 + $0x2b0] sm:$0xff] }
  0x47   :  { %1322 = vmatprep.subr.bf16.mxu1 %v1321_v58  ;;  %v224_v57 = vld [vmem:[#allocation5 + $0x318] sm:$0xff]  ;;  %v209_v58 = vld [vmem:[#allocation5 + $0x2a0] sm:$0xff]  ;;  %v1335_v10 = vpack.c.bf16 %v192_v53, %v191_v52  ;;  %v226_v23 = vld [vmem:[#allocation5 + $0x328] sm:$0xff]  ;;  %v1339_v28 = vpack.c.bf16 %v194_v19, %v193_v18 }
  0x48   :  { %v1337_v16 = vpack.c.bf16 %v210_v59, %v209_v58  ;;  %v195_v31 = vld [vmem:[#allocation5 + $0x230] sm:$0xff]  ;;  %v230_v44 = vld [vmem:[#allocation5 + $0x348] sm:$0xff]  ;;  %v200_v52 = vld [vmem:[#allocation5 + $0x258] sm:$0xff] }
  0x49   :  { %1292 = vmatpush3.bf16.msra.mxu0 %v1291_v62  ;;  %v241_v62 = vld [vmem:[#allocation5 + $0x3a0] sm:$0xff]  ;;  %v215_v45 = vld [vmem:[#allocation5 + $0x2d0] sm:$0xff]  ;;  %v218_v58 = vld [vmem:[#allocation5 + $0x2e8] sm:$0xff] }
  0x4a   :  { %1324 = vmatpush3.bf16.msra.mxu1 %v1323_v14  ;;  %1294 = vmatprep.subr.bf16.mxu0 %v1293_v15  ;;  %v1367_v15 = vpack.c.bf16 %v224_v57, %v223_v54  ;;  %v1369_v22 = vpack.c.bf16 %v242_v63, %v241_v62  ;;  %v231_v53 = vld [vmem:[#allocation5 + $0x350] sm:$0xff]  ;;  %v217_v57 = vld [vmem:[#allocation5 + $0x2e0] sm:$0xff]  ;;  %v234_v19 = vld [vmem:[#allocation5 + $0x368] sm:$0xff] }
  0x4b   :  { %1326 = vmatprep.subr.bf16.mxu1 %v1325_v20  ;;  %v225_v20 = vld [vmem:[#allocation5 + $0x320] sm:$0xff] }
  0x4c   :  { %v1371_v29 = vpack.c.bf16 %v226_v23, %v225_v20  ;;  %v220_v20 = vld [vmem:[#allocation5 + $0x2f8] sm:$0xff]  ;;  %v251_v23 = vld [vmem:[#allocation5 + $0x3f0] sm:$0xff] }
  0x4d   :  { %1296 = vmatpush3.bf16.msra.mxu0 %v1295_v25  ;;  %v212_v25 = vld [vmem:[#allocation5 + $0x2b8] sm:$0xff] }
  0x4e   :  { %1328 = vmatpush3.bf16.msra.mxu1 %v1327_v26  ;;  %1330 = vmatprep.subr.bf16.mxu0 %v1329_v30  ;;  %v243_v26 = vld [vmem:[#allocation5 + $0x3b0] sm:$0xff]  ;;  %v1341_v30 = vpack.c.bf16 %v212_v25, %v211_v24  ;;  %v252_v24 = vld [vmem:[#allocation5 + $0x3f8] sm:$0xff] }
  0x4f   :  { %1362 = vmatprep.subr.bf16.mxu1 %v1361_v32  ;;  %v196_v32 = vld [vmem:[#allocation5 + $0x238] sm:$0xff] }
  0xc0   :  { %v1742_v33 = vpop.xlane.xlu0 %75 }
  0xc1   :  { %v78_v34 = vsub.f32 %v1702_v1, %v1742_v33  ;;  %v80_v35 = vsub.f32 %v1706_v3, %v1742_v33  ;;  %v77_v36 = vsub.f32 %v1700_v0, %v1742_v33  ;;  %v79_v37 = vsub.f32 %v1704_v2, %v1742_v33  ;;  %v189_v0 = vld [vmem:[#allocation5 + $0x200] sm:$0xff]  ;;  %v190_v2 = vld [vmem:[#allocation5 + $0x208] sm:$0xff] }
  0xc2   :  { %v82_v38 = vsub.f32 %v1710_v5, %v1742_v33  ;;  %v84_v39 = vsub.f32 %v1714_v7, %v1742_v33  ;;  %v207_v5 = vld [vmem:[#allocation5 + $0x290] sm:$0xff]  ;;  %v1331_v7 = vpack.c.bf16 %v190_v2, %v189_v0  ;;  %v229_v0 = vld [vmem:[#allocation5 + $0x340] sm:$0xff]  ;;  %v81_v48 = vsub.f32 %v1708_v4, %v1742_v33  ;;  %v250_v4 = vld [vmem:[#allocation5 + $0x3e8] sm:$0xff] }
  0xc3   :  { %v95_v40 = vmul.f32 1.442695, %v78_v34  ;;  %v99_v41 = vmul.f32 1.442695, %v80_v35  ;;  %v93_v42 = vmul.f32 1.442695, %v77_v36  ;;  %v1333_v56 = vpack.c.bf16 %v208_v46, %v207_v5 }
  0xc4   :  { %v97_v43 = vmul.f32 1.442695, %v79_v37  ;;  %v103_v1 = vmul.f32 1.442695, %v82_v38  ;;  %v107_v3 = vmul.f32 1.442695, %v84_v39  ;;  %v1373_v35 = vpack.c.bf16 %v244_v27, %v243_v26 }
  0xc5   :  { %1530 = vpow2.f32 %v95_v40  ;;  %v227_v34 = vld [vmem:[#allocation5 + $0x330] sm:$0xff]  ;;  %v228_v36 = vld [vmem:[#allocation5 + $0x338] sm:$0xff]  ;;  %v213_v37 = vld [vmem:[#allocation5 + $0x2c0] sm:$0xff]  ;;  %v1379_v49 = vpack.c.bf16 %v230_v44, %v229_v0  ;;  %v83_v54 = vsub.f32 %v1712_v6, %v1742_v33  ;;  %v86_v59 = vsub.f32 %v1722_v11, %v1742_v33 }
  0xc6   :  { %1532 = vpow2.f32 %v99_v41  ;;  %v214_v38 = vld [vmem:[#allocation5 + $0x2c8] sm:$0xff]  ;;  %v245_v39 = vld [vmem:[#allocation5 + $0x3c0] sm:$0xff]  ;;  %v1343_v41 = vpack.c.bf16 %v196_v32, %v195_v31  ;;  %v216_v5 = vld [vmem:[#allocation5 + $0x2d8] sm:$0xff]  ;;  %v101_v63 = vmul.f32 1.442695, %v81_v48  ;;  %v1353_v6 = vpack.c.bf16 %v218_v58, %v217_v57 }
  0xc7   :  { %1534 = vpow2.f32 %v93_v42  ;;  %v246_v40 = vld [vmem:[#allocation5 + $0x3c8] sm:$0xff]  ;;  %v1375_v42 = vpack.c.bf16 %v228_v36, %v227_v34  ;;  %v247_v46 = vld [vmem:[#allocation5 + $0x3d0] sm:$0xff]  ;;  %v1389_v31 = vpack.c.bf16 %v252_v24, %v251_v23  ;;  %v236_v32 = vld [vmem:[#allocation5 + $0x378] sm:$0xff] }
  0xc8   :  { %1536 = vpow2.f32 %v97_v43  ;;  %v1345_v43 = vpack.c.bf16 %v214_v38, %v213_v37  ;;  %v1377_v2 = vpack.c.bf16 %v246_v40, %v245_v39  ;;  %v219_v11 = vld [vmem:[#allocation5 + $0x2f0] sm:$0xff]  ;;  %v269_v34 = vld [vmem:[#allocation5 + $0x480] sm:$0xff]  ;;  %v302_v37 = vld [vmem:[#allocation5 + $0x588] sm:$0xff] }
  0xc9   :  { %1538 = vpow2.f32 %v103_v1  ;;  %v197_v1 = vld [vmem:[#allocation5 + $0x240] sm:$0xff]  ;;  %v1357_v27 = vpack.c.bf16 %v220_v20, %v219_v11  ;;  %v271_v0 = vld [vmem:[#allocation5 + $0x490] sm:$0xff]  ;;  %v306_v57 = vld [vmem:[#allocation5 + $0x5a8] sm:$0xff] }
  0xca   :  { %1540 = vpow2.f32 %v107_v3  ;;  %v198_v3 = vld [vmem:[#allocation5 + $0x248] sm:$0xff]  ;;  %v301_v36 = vld [vmem:[#allocation5 + $0x580] sm:$0xff]  ;;  %v287_v48 = vld [vmem:[#allocation5 + $0x510] sm:$0xff] }
  0xcb   :  { %1542 = vpow2.f32 %v101_v63  ;;  %v258_v63 = vld [vmem:[#allocation5 + $0x428] sm:$0xff]  ;;  %v260_v23 = vld [vmem:[#allocation5 + $0x438] sm:$0xff]  ;;  %v291_v24 = vld [vmem:[#allocation5 + $0x530] sm:$0xff] }
  0xcf   :  { %v1531_v47 = vpop.eup %1530 }
  0xd0   :  { %v1533_v50 = vpop.eup %1532  ;;  %445 = vmatprep.mubr.f32.mxu0 %v1531_v47  ;;  %v248_v47 = vld [vmem:[#allocation5 + $0x3d8] sm:$0xff] }
  0xd1   :  { %v1535_v55 = vpop.eup %1534  ;;  %515 = vmatprep.mubr.f32.mxu1 %v1533_v50  ;;  %v1349_v50 = vpack.c.bf16 %v216_v5, %v215_v45  ;;  %v303_v45 = vld [vmem:[#allocation5 + $0x590] sm:$0xff]  ;;  %v304_v5 = vld [vmem:[#allocation5 + $0x598] sm:$0xff] }
  0xd2   :  { %v1537_v60 = vpop.eup %1536  ;;  %446 = vmatmul.mubr.f32.vlgmr.msra.gmra.mrb[0].mxu0 %v1535_v55  ;;  %v1381_v55 = vpack.c.bf16 %v248_v47, %v247_v46  ;;  %v255_v47 = vld [vmem:[#allocation5 + $0x410] sm:$0xff] }
  0xd3   :  { %v1539_v9 = vpop.eup %1538  ;;  %516 = vmatmul.mubr.f32.vlgmr.msra.gmra.mrb[0].mxu1 %v1537_v60  ;;  %1332 = vmatpush3.bf16.msra.mxu0 %v1331_v7  ;;  %v1347_v7 = vpack.c.bf16 %v198_v3, %v197_v1  ;;  %v249_v60 = vld [vmem:[#allocation5 + $0x3e0] sm:$0xff]  ;;  %v286_v3 = vld [vmem:[#allocation5 + $0x508] sm:$0xff] }
  0xd4   :  { %v1541_v14 = vpop.eup %1540  ;;  %1364 = vmatpush3.bf16.msra.mxu1 %v1363_v51  ;;  %585 = vmatprep.mubr.f32.mxu0 %v1539_v9  ;;  %v199_v51 = vld [vmem:[#allocation5 + $0x250] sm:$0xff]  ;;  %v1385_v18 = vpack.c.bf16 %v250_v4, %v249_v60  ;;  %v285_v1 = vld [vmem:[#allocation5 + $0x500] sm:$0xff] }
  0xd5   :  { %655 = vmatprep.mubr.f32.mxu1 %v1541_v14  ;;  %1334 = vmatprep.subr.bf16.mxu0 %v1333_v56  ;;  %v232_v56 = vld [vmem:[#allocation5 + $0x358] sm:$0xff]  ;;  %v1351_v62 = vpack.c.bf16 %v200_v52, %v199_v51  ;;  %v202_v14 = vld [vmem:[#allocation5 + $0x268] sm:$0xff]  ;;  %v1427_v46 = vpack.c.bf16 %v286_v3, %v285_v1  ;;  %v273_v52 = vld [vmem:[#allocation5 + $0x4a0] sm:$0xff]  ;;  %v85_v1 = vsub.f32 %v1716_v8, %v1742_v33 }
  0xd6   :  { %1366 = vmatprep.subr.bf16.mxu1 %v1365_v61  ;;  %v88_v61 = vsub.f32 %v1726_v13, %v1742_v33  ;;  %v1383_v9 = vpack.c.bf16 %v232_v56, %v231_v53  ;;  %v288_v51 = vld [vmem:[#allocation5 + $0x518] sm:$0xff]  ;;  %v274_v53 = vld [vmem:[#allocation5 + $0x4a8] sm:$0xff]  ;;  %v305_v56 = vld [vmem:[#allocation5 + $0x5a0] sm:$0xff] }
  0xd7   :  { %1336 = vmatpush3.bf16.msra.mxu0 %v1335_v10  ;;  %v201_v10 = vld [vmem:[#allocation5 + $0x260] sm:$0xff]  ;;  %v1431_v4 = vpack.c.bf16 %v288_v51, %v287_v48  ;;  %v282_v48 = vld [vmem:[#allocation5 + $0x4e8] sm:$0xff]  ;;  %v92_v51 = vsub.f32 %v1736_v21, %v1742_v33 }
  0xd8   :  { %1368 = vmatpush3.bf16.msra.mxu1 %v1367_v15  ;;  %1338 = vmatprep.subr.bf16.mxu0 %v1337_v16  ;;  %v233_v15 = vld [vmem:[#allocation5 + $0x360] sm:$0xff]  ;;  %v105_v16 = vmul.f32 1.442695, %v83_v54  ;;  %v115_v13 = vmul.f32 1.442695, %v88_v61  ;;  %v1355_v25 = vpack.c.bf16 %v202_v14, %v201_v10  ;;  %v1401_v61 = vpack.c.bf16 %v274_v53, %v273_v52  ;;  %v290_v10 = vld [vmem:[#allocation5 + $0x528] sm:$0xff] }
  0xd9   :  { %1370 = vmatprep.subr.bf16.mxu1 %v1369_v22  ;;  %v111_v22 = vmul.f32 1.442695, %v86_v59  ;;  %v1387_v26 = vpack.c.bf16 %v234_v19, %v233_v15  ;;  %v275_v14 = vld [vmem:[#allocation5 + $0x4b0] sm:$0xff]  ;;  %v276_v15 = vld [vmem:[#allocation5 + $0x4b8] sm:$0xff]  ;;  %v314_v8 = vld [vmem:[#allocation5 + $0x5e8] sm:$0xff] }
  0xda   :  { %1544 = vpow2.f32 %v105_v16  ;;  %v307_v16 = vld [vmem:[#allocation5 + $0x5b0] sm:$0xff]  ;;  %v1405_v20 = vpack.c.bf16 %v276_v15, %v275_v14  ;;  %v109_v53 = vmul.f32 1.442695, %v85_v1  ;;  %v123_v21 = vmul.f32 1.442695, %v92_v51  ;;  %v268_v15 = vld [vmem:[#allocation5 + $0x478] sm:$0xff] }
  0xdb   :  { %1340 = vmatpush3.bf16.msra.mxu0 %v1339_v28  ;;  %v203_v28 = vld [vmem:[#allocation5 + $0x270] sm:$0xff]  ;;  %1546 = vpow2.f32 %v111_v22  ;;  %v337_v1 = vld [vmem:[#allocation5 + $0x6a0] sm:$0xff] }
  0xdc   :  { %1372 = vmatpush3.bf16.msra.mxu1 %v1371_v29  ;;  %1342 = vmatprep.subr.bf16.mxu0 %v1341_v30  ;;  %v204_v29 = vld [vmem:[#allocation5 + $0x278] sm:$0xff]  ;;  %v235_v30 = vld [vmem:[#allocation5 + $0x370] sm:$0xff]  ;;  %1548 = vpow2.f32 %v115_v13 }
  0xdd   :  { %1374 = vmatprep.subr.bf16.mxu1 %v1373_v35  ;;  %v270_v35 = vld [vmem:[#allocation5 + $0x488] sm:$0xff]  ;;  %v1359_v38 = vpack.c.bf16 %v204_v29, %v203_v28  ;;  %v1391_v39 = vpack.c.bf16 %v236_v32, %v235_v30  ;;  %v259_v22 = vld [vmem:[#allocation5 + $0x430] sm:$0xff]  ;;  %v309_v28 = vld [vmem:[#allocation5 + $0x5c0] sm:$0xff]  ;;  %1550 = vpow2.f32 %v109_v53 }
  0xde   :  { %v1393_v40 = vpack.c.bf16 %v270_v35, %v269_v34  ;;  %v310_v29 = vld [vmem:[#allocation5 + $0x5c8] sm:$0xff]  ;;  %v1407_v30 = vpack.c.bf16 %v260_v23, %v259_v22  ;;  %v261_v34 = vld [vmem:[#allocation5 + $0x440] sm:$0xff]  ;;  %v267_v14 = vld [vmem:[#allocation5 + $0x470] sm:$0xff] }
  0xdf   :  { %1344 = vmatpush3.bf16.msra.mxu0 %v1343_v41  ;;  %v253_v41 = vld [vmem:[#allocation5 + $0x400] sm:$0xff]  ;;  %v262_v35 = vld [vmem:[#allocation5 + $0x448] sm:$0xff]  ;;  %v339_v53 = vld [vmem:[#allocation5 + $0x6b0] sm:$0xff] }
  0xe0   :  { %1376 = vmatpush3.bf16.msra.mxu1 %v1375_v42  ;;  %1346 = vmatprep.subr.bf16.mxu0 %v1345_v43  ;;  %v254_v42 = vld [vmem:[#allocation5 + $0x408] sm:$0xff]  ;;  %v1425_v43 = vpack.c.bf16 %v302_v37, %v301_v36  ;;  %v293_v36 = vld [vmem:[#allocation5 + $0x540] sm:$0xff]  ;;  %v1441_v37 = vpack.c.bf16 %v310_v29, %v309_v28 }
  0xe1   :  { %1378 = vmatprep.subr.bf16.mxu1 %v1377_v2  ;;  %v272_v2 = vld [vmem:[#allocation5 + $0x498] sm:$0xff]  ;;  %v1395_v44 = vpack.c.bf16 %v254_v42, %v253_v41  ;;  %v311_v41 = vld [vmem:[#allocation5 + $0x5d0] sm:$0xff]  ;;  %v365_v22 = vld [vmem:[#allocation5 + $0x780] sm:$0xff] }
  0xe2   :  { %v312_v42 = vld [vmem:[#allocation5 + $0x5d8] sm:$0xff]  ;;  %v366_v23 = vld [vmem:[#allocation5 + $0x788] sm:$0xff]  ;;  %v349_v29 = vld [vmem:[#allocation5 + $0x700] sm:$0xff] }
  0xe3   :  { %1348 = vmatpush3.bf16.msra.mxu0 %v1347_v7  ;;  %v256_v7 = vld [vmem:[#allocation5 + $0x418] sm:$0xff]  ;;  %v1489_v28 = vpack.c.bf16 %v366_v23, %v365_v22  ;;  %v375_v23 = vld [vmem:[#allocation5 + $0x7d0] sm:$0xff] }
  0xe4   :  { %1380 = vmatpush3.bf16.msra.mxu1 %v1379_v49  ;;  %1350 = vmatprep.subr.bf16.mxu0 %v1349_v50  ;;  %v1543_v49 = vpop.eup %1542  ;;  %v1397_v50 = vpack.c.bf16 %v272_v2, %v271_v0  ;;  %v1399_v59 = vpack.c.bf16 %v256_v7, %v255_v47  ;;  %v263_v2 = vld [vmem:[#allocation5 + $0x450] sm:$0xff]  ;;  %v296_v47 = vld [vmem:[#allocation5 + $0x558] sm:$0xff]  ;;  %v281_v7 = vld [vmem:[#allocation5 + $0x4e0] sm:$0xff] }
  0xe5   :  { %1382 = vmatprep.subr.bf16.mxu1 %v1381_v55  ;;  %v1545_v54 = vpop.eup %1544  ;;  %v1429_v55 = vpack.c.bf16 %v304_v5, %v303_v45  ;;  %v295_v45 = vld [vmem:[#allocation5 + $0x550] sm:$0xff]  ;;  %v87_v5 = vsub.f32 %v1724_v12, %v1742_v33  ;;  %v1417_v12 = vpack.c.bf16 %v282_v48, %v281_v7  ;;  %v344_v22 = vld [vmem:[#allocation5 + $0x6d8] sm:$0xff] }
  0xe6   :  { %v1547_v58 = vpop.eup %1546 }
  0xe7   :  { %1352 = vmatpush3.bf16.msra.mxu0 %v1351_v62  ;;  %v1549_v60 = vpop.eup %1548  ;;  %v257_v62 = vld [vmem:[#allocation5 + $0x420] sm:$0xff] }
  0xe8   :  { %1384 = vmatpush3.bf16.msra.mxu1 %v1383_v9  ;;  %1354 = vmatprep.subr.bf16.mxu0 %v1353_v6  ;;  %v289_v9 = vld [vmem:[#allocation5 + $0x520] sm:$0xff]  ;;  %v1433_v6 = vpack.c.bf16 %v306_v57, %v305_v56  ;;  %v1403_v19 = vpack.c.bf16 %v258_v63, %v257_v62  ;;  %v266_v56 = vld [vmem:[#allocation5 + $0x468] sm:$0xff]  ;;  %v315_v62 = vld [vmem:[#allocation5 + $0x5f0] sm:$0xff] }
  0xe9   :  { %1386 = vmatprep.subr.bf16.mxu1 %v1385_v18  ;;  %v308_v18 = vld [vmem:[#allocation5 + $0x5b8] sm:$0xff]  ;;  %v1435_v11 = vpack.c.bf16 %v290_v10, %v289_v9  ;;  %v297_v57 = vld [vmem:[#allocation5 + $0x560] sm:$0xff] }
  0xea   :  { %v1437_v13 = vpack.c.bf16 %v308_v18, %v307_v16  ;;  %v316_v63 = vld [vmem:[#allocation5 + $0x5f8] sm:$0xff]  ;;  %v299_v16 = vld [vmem:[#allocation5 + $0x570] sm:$0xff] }
  0xeb   :  { %1356 = vmatpush3.bf16.msra.mxu0 %v1355_v25  ;;  %v292_v25 = vld [vmem:[#allocation5 + $0x538] sm:$0xff]  ;;  %v1453_v18 = vpack.c.bf16 %v316_v63, %v315_v62  ;;  %v341_v62 = vld [vmem:[#allocation5 + $0x6c0] sm:$0xff]  ;;  %v342_v63 = vld [vmem:[#allocation5 + $0x6c8] sm:$0xff] }
  0xec   :  { %1388 = vmatpush3.bf16.msra.mxu1 %v1387_v26  ;;  %1358 = vmatprep.subr.bf16.mxu0 %v1357_v27  ;;  %v277_v26 = vld [vmem:[#allocation5 + $0x4c0] sm:$0xff]  ;;  %v278_v27 = vld [vmem:[#allocation5 + $0x4c8] sm:$0xff] }
  0xed   :  { %1390 = vmatprep.subr.bf16.mxu1 %v1389_v31  ;;  %v1439_v31 = vpack.c.bf16 %v292_v25, %v291_v24  ;;  %v1409_v32 = vpack.c.bf16 %v278_v27, %v277_v26  ;;  %v1423_v24 = vpack.c.bf16 %v268_v15, %v267_v14  ;;  %v317_v26 = vld [vmem:[#allocation5 + $0x600] sm:$0xff]  ;;  %v318_v27 = vld [vmem:[#allocation5 + $0x608] sm:$0xff]  ;;  %v1473_v14 = vpack.c.bf16 %v342_v63, %v341_v62 }
  0xee   :  { %v325_v15 = vld [vmem:[#allocation5 + $0x640] sm:$0xff] }
  0xef   :  { %1360 = vmatpush3.bf16.msra.mxu0 %v1359_v38  ;;  %v294_v38 = vld [vmem:[#allocation5 + $0x548] sm:$0xff] }
  0xf0   :  { %1392 = vmatpush3.bf16.msra.mxu1 %v1391_v39  ;;  %1394 = vmatprep.subr.bf16.mxu0 %v1393_v40  ;;  %v279_v39 = vld [vmem:[#allocation5 + $0x4d0] sm:$0xff]  ;;  %v280_v40 = vld [vmem:[#allocation5 + $0x4d8] sm:$0xff]  ;;  %v1443_v3 = vpack.c.bf16 %v294_v38, %v293_v36 }
  0xf1   :  { %1426 = vmatprep.subr.bf16.mxu1 %v1425_v43  ;;  %v1411_v43 = vpack.c.bf16 %v262_v35, %v261_v34  ;;  %v1413_v0 = vpack.c.bf16 %v280_v40, %v279_v39  ;;  %v1459_v34 = vpack.c.bf16 %v318_v27, %v317_v26  ;;  %v367_v35 = vld [vmem:[#allocation5 + $0x790] sm:$0xff]  ;;  %v368_v36 = vld [vmem:[#allocation5 + $0x798] sm:$0xff] }
  0xf2   :  { %586 = vmatmul.mubr.f32.vlgmr.msra.gmra.mrb[2].mxu0 %v1543_v49  ;;  %v90_v49 = vsub.f32 %v1732_v17, %v1742_v33  ;;  %v283_v17 = vld [vmem:[#allocation5 + $0x4f0] sm:$0xff]  ;;  %v320_v39 = vld [vmem:[#allocation5 + $0x618] sm:$0xff] }
  0xf3   :  { %656 = vmatmul.mubr.f32.vlgmr.msra.gmra.mrb[2].mxu1 %v1545_v54  ;;  %1396 = vmatpush3.bf16.msra.mxu0 %v1395_v44  ;;  %v264_v44 = vld [vmem:[#allocation5 + $0x458] sm:$0xff]  ;;  %v1447_v54 = vpack.c.bf16 %v296_v47, %v295_v45  ;;  %v319_v38 = vld [vmem:[#allocation5 + $0x610] sm:$0xff]  ;;  %v370_v45 = vld [vmem:[#allocation5 + $0x7a8] sm:$0xff] }
  0xf4   :  { %725 = vmatprep.mubr.f32.mxu0 %v1547_v58  ;;  %1428 = vmatpush3.bf16.msra.mxu1 %v1427_v46  ;;  %v1445_v46 = vpack.c.bf16 %v312_v42, %v311_v41  ;;  %v1415_v52 = vpack.c.bf16 %v264_v44, %v263_v2  ;;  %v113_v58 = vmul.f32 1.442695, %v87_v5  ;;  %v351_v40 = vld [vmem:[#allocation5 + $0x710] sm:$0xff]  ;;  %v1551_v41 = vpop.eup %1550  ;;  %v1493_v2 = vpack.c.bf16 %v368_v36, %v367_v35  ;;  %v369_v44 = vld [vmem:[#allocation5 + $0x7a0] sm:$0xff]  ;;  %v360_v36 = vld [vmem:[#allocation5 + $0x758] sm:$0xff] }
  0xf5   :  { %795 = vmatprep.mubr.f32.mxu1 %v1549_v60  ;;  %1398 = vmatprep.subr.bf16.mxu0 %v1397_v50  ;;  %v313_v50 = vld [vmem:[#allocation5 + $0x5e0] sm:$0xff]  ;;  %v298_v60 = vld [vmem:[#allocation5 + $0x568] sm:$0xff]  ;;  %v1497_v51 = vpack.c.bf16 %v370_v45, %v369_v44 }
  0xf6   :  { %1430 = vmatprep.subr.bf16.mxu1 %v1429_v55  ;;  %v265_v55 = vld [vmem:[#allocation5 + $0x460] sm:$0xff]  ;;  %1552 = vpow2.f32 %v113_v58  ;;  %v362_v45 = vld [vmem:[#allocation5 + $0x768] sm:$0xff] }
  0xf7   :  { %1400 = vmatpush3.bf16.msra.mxu0 %v1399_v59  ;;  %v1449_v59 = vpack.c.bf16 %v314_v8, %v313_v50  ;;  %v1419_v9 = vpack.c.bf16 %v266_v56, %v265_v55  ;;  %v322_v50 = vld [vmem:[#allocation5 + $0x628] sm:$0xff]  ;;  %v353_v8 = vld [vmem:[#allocation5 + $0x720] sm:$0xff]  ;;  %v372_v55 = vld [vmem:[#allocation5 + $0x7b8] sm:$0xff] }
  0xf8   :  { %1432 = vmatpush3.bf16.msra.mxu1 %v1431_v4  ;;  %1402 = vmatprep.subr.bf16.mxu0 %v1401_v61  ;;  %v284_v4 = vld [vmem:[#allocation5 + $0x4f8] sm:$0xff]  ;;  %v119_v61 = vmul.f32 1.442695, %v90_v49  ;;  %v321_v49 = vld [vmem:[#allocation5 + $0x620] sm:$0xff] }
  0xf9   :  { %1434 = vmatprep.subr.bf16.mxu1 %v1433_v6  ;;  %v1451_v6 = vpack.c.bf16 %v298_v60, %v297_v57  ;;  %v1421_v10 = vpack.c.bf16 %v284_v4, %v283_v17  ;;  %v1467_v56 = vpack.c.bf16 %v322_v50, %v321_v49  ;;  %v324_v60 = vld [vmem:[#allocation5 + $0x638] sm:$0xff]  ;;  %v355_v17 = vld [vmem:[#allocation5 + $0x730] sm:$0xff] }
  0xfa   :  { %1554 = vpow2.f32 %v119_v61  ;;  %v356_v61 = vld [vmem:[#allocation5 + $0x738] sm:$0xff] }
  0xfb   :  { %1404 = vmatpush3.bf16.msra.mxu0 %v1403_v19  ;;  %v300_v19 = vld [vmem:[#allocation5 + $0x578] sm:$0xff]  ;;  %1556 = vpow2.f32 %v123_v21  ;;  %v373_v21 = vld [vmem:[#allocation5 + $0x7c0] sm:$0xff] }
  0xfc   :  { %1436 = vmatpush3.bf16.msra.mxu1 %v1435_v11  ;;  %1406 = vmatprep.subr.bf16.mxu0 %v1405_v20  ;;  %v333_v11 = vld [vmem:[#allocation5 + $0x680] sm:$0xff]  ;;  %v334_v20 = vld [vmem:[#allocation5 + $0x688] sm:$0xff] }
  0xfd   :  { %1438 = vmatprep.subr.bf16.mxu1 %v1437_v13  ;;  %v1455_v13 = vpack.c.bf16 %v300_v19, %v299_v16  ;;  %v1457_v25 = vpack.c.bf16 %v334_v20, %v333_v11  ;;  %v326_v16 = vld [vmem:[#allocation5 + $0x648] sm:$0xff]  ;;  %v343_v20 = vld [vmem:[#allocation5 + $0x6d0] sm:$0xff] }
  0xfe   :  { %v358_v11 = vld [vmem:[#allocation5 + $0x748] sm:$0xff] }
  0xff   :  { %1408 = vmatpush3.bf16.msra.mxu0 %v1407_v30  ;;  %v350_v30 = vld [vmem:[#allocation5 + $0x708] sm:$0xff] }
 0x100   :  { %1440 = vmatpush3.bf16.msra.mxu1 %v1439_v31  ;;  %1410 = vmatprep.subr.bf16.mxu0 %v1409_v32  ;;  %v335_v31 = vld [vmem:[#allocation5 + $0x690] sm:$0xff]  ;;  %v336_v32 = vld [vmem:[#allocation5 + $0x698] sm:$0xff] }
 0x101   :  { %1442 = vmatprep.subr.bf16.mxu1 %v1441_v37  ;;  %v1491_v37 = vpack.c.bf16 %v350_v30, %v349_v29  ;;  %v1461_v42 = vpack.c.bf16 %v336_v32, %v335_v31  ;;  %v327_v29 = vld [vmem:[#allocation5 + $0x650] sm:$0xff]  ;;  %v328_v30 = vld [vmem:[#allocation5 + $0x658] sm:$0xff] }
 0x102   :  { %v359_v31 = vld [vmem:[#allocation5 + $0x750] sm:$0xff] }
 0x103   :  { %1412 = vmatpush3.bf16.msra.mxu0 %v1411_v43  ;;  %v352_v43 = vld [vmem:[#allocation5 + $0x718] sm:$0xff]  ;;  %v1565_v32 = vld [vmem:[#allocation2 + $0x70] sm:$0xff] }
 0x104   :  { %1444 = vmatpush3.bf16.msra.mxu1 %v1443_v3  ;;  %1414 = vmatprep.subr.bf16.mxu0 %v1413_v0  ;;  %v338_v3 = vld [vmem:[#allocation5 + $0x6a8] sm:$0xff]  ;;  %v1553_v0 = vpop.eup %1552  ;;  %v1495_v7 = vpack.c.bf16 %v352_v43, %v351_v40  ;;  %v1511_v43 = vpack.c.bf16 %v360_v36, %v359_v31 }
 0x105   :  { %1446 = vmatprep.subr.bf16.mxu1 %v1445_v46  ;;  %v1555_v5 = vpop.eup %1554  ;;  %v1463_v46 = vpack.c.bf16 %v320_v39, %v319_v38  ;;  %v1465_v48 = vpack.c.bf16 %v338_v3, %v337_v1  ;;  %v346_v38 = vld [vmem:[#allocation5 + $0x6e8] sm:$0xff]  ;;  %v377_v39 = vld [vmem:[#allocation5 + $0x7e0] sm:$0xff] }
 0x106   :  { %v1557_v47 = vpop.eup %1556  ;;  %v378_v40 = vld [vmem:[#allocation5 + $0x7e8] sm:$0xff]  ;;  %v329_v3 = vld [vmem:[#allocation5 + $0x660] sm:$0xff] }
 0x107   :  { %1416 = vmatpush3.bf16.msra.mxu0 %v1415_v52  ;;  %v354_v52 = vld [vmem:[#allocation5 + $0x728] sm:$0xff] }
 0x108   :  { %1448 = vmatpush3.bf16.msra.mxu1 %v1447_v54  ;;  %1418 = vmatprep.subr.bf16.mxu0 %v1417_v12  ;;  %v340_v54 = vld [vmem:[#allocation5 + $0x6b8] sm:$0xff]  ;;  %v371_v12 = vld [vmem:[#allocation5 + $0x7b0] sm:$0xff]  ;;  %v1499_v57 = vpack.c.bf16 %v354_v52, %v353_v8 }
 0x109   :  { %1450 = vmatprep.subr.bf16.mxu1 %v1449_v59  ;;  %v1469_v58 = vpack.c.bf16 %v340_v54, %v339_v53  ;;  %v323_v59 = vld [vmem:[#allocation5 + $0x630] sm:$0xff]  ;;  %v1501_v4 = vpack.c.bf16 %v372_v55, %v371_v12  ;;  %v364_v54 = vld [vmem:[#allocation5 + $0x778] sm:$0xff] }
 0x10a   :  { %v331_v8 = vld [vmem:[#allocation5 + $0x670] sm:$0xff] }
 0x10b   :  { %1420 = vmatpush3.bf16.msra.mxu0 %v1419_v9  ;;  %v374_v9 = vld [vmem:[#allocation5 + $0x7c8] sm:$0xff]  ;;  %v363_v53 = vld [vmem:[#allocation5 + $0x770] sm:$0xff] }
 0x10c   :  { %1452 = vmatpush3.bf16.msra.mxu1 %v1451_v6  ;;  %1422 = vmatprep.subr.bf16.mxu0 %v1421_v10  ;;  %v1471_v6 = vpack.c.bf16 %v324_v60, %v323_v59  ;;  %v1503_v10 = vpack.c.bf16 %v356_v61, %v355_v17  ;;  %v1505_v19 = vpack.c.bf16 %v374_v9, %v373_v21 }
 0x10d   :  { %1454 = vmatprep.subr.bf16.mxu1 %v1453_v18  ;;  %v357_v18 = vld [vmem:[#allocation5 + $0x740] sm:$0xff]  ;;  %v1519_v55 = vpack.c.bf16 %v364_v54, %v363_v53 }
 0x10e   :  { %v1507_v27 = vpack.c.bf16 %v358_v11, %v357_v18 }
 0x10f   :  { %1424 = vmatpush3.bf16.msra.mxu0 %v1423_v24  ;;  %v376_v24 = vld [vmem:[#allocation5 + $0x7d8] sm:$0xff] }
 0x110   :  { %1456 = vmatpush3.bf16.msra.mxu1 %v1455_v13  ;;  %1458 = vmatprep.subr.bf16.mxu0 %v1457_v25  ;;  %v1475_v13 = vpack.c.bf16 %v326_v16, %v325_v15  ;;  %v1564_v25 = vld [vmem:[#allocation2 + $0x60] sm:$0xff]  ;;  %v1509_v35 = vpack.c.bf16 %v376_v24, %v375_v23 }
 0x111   :  { %1490 = vmatprep.subr.bf16.mxu1 %v1489_v28  ;;  %v89_v26 = vsub.f32 %v1564_v25, %v1742_v33  ;;  %v1477_v28 = vpack.c.bf16 %v344_v22, %v343_v20 }
 0x112   :  { %726 = vmatmul.mubr.f32.vlgmr.msra.gmra.mrb[4].mxu0 %v1551_v41  ;;  %v1479_v41 = vpack.c.bf16 %v328_v30, %v327_v29 }
 0x113   :  { %796 = vmatmul.mubr.f32.vlgmr.msra.gmra.mrb[4].mxu1 %v1553_v0  ;;  %1460 = vmatpush3.bf16.msra.mxu0 %v1459_v34  ;;  %v91_v34 = vsub.f32 %v1565_v32, %v1742_v33  ;;  %v330_v0 = vld [vmem:[#allocation5 + $0x668] sm:$0xff]  ;;  %v1513_v33 = vpack.c.bf16 %v378_v40, %v377_v39 }
 0x114   :  { %865 = vmatprep.mubr.f32.mxu0 %v1555_v5  ;;  %1492 = vmatpush3.bf16.msra.mxu1 %v1491_v37  ;;  %v345_v37 = vld [vmem:[#allocation5 + $0x6e0] sm:$0xff]  ;;  %v347_v5 = vld [vmem:[#allocation5 + $0x6f0] sm:$0xff] }
 0x115   :  { %935 = vmatprep.mubr.f32.mxu1 %v1557_v47  ;;  %1462 = vmatprep.subr.bf16.mxu0 %v1461_v42  ;;  %v117_v42 = vmul.f32 1.442695, %v89_v26  ;;  %v1481_v1 = vpack.c.bf16 %v346_v38, %v345_v37  ;;  %v121_v44 = vmul.f32 1.442695, %v91_v34  ;;  %v379_v47 = vld [vmem:[#allocation5 + $0x7f0] sm:$0xff]  ;;  %v949_v38 = vld [vmem:[%s1793_s1] sm:$0xff] }
 0x116   :  { %1494 = vmatprep.subr.bf16.mxu1 %v1493_v2  ;;  %v361_v2 = vld [vmem:[#allocation5 + $0x760] sm:$0xff]  ;;  %s1643_s1 = smov [#allocation7]  }
 0x117   :  { %1464 = vmatpush3.bf16.msra.mxu0 %v1463_v46  ;;  %v348_v46 = vld [vmem:[#allocation5 + $0x6f8] sm:$0xff]  ;;  %1558 = vpow2.f32 %v117_v42  ;;  %v1515_v49 = vpack.c.bf16 %v362_v45, %v361_v2  ;;  %s974_s17 = sshll.u32 %s1643_s1, 4  ;;  %s975_s17 = int_to_ptr.vmem [resolvable:$true] %s974_s17 }
 0x118   :  { %1496 = vmatpush3.bf16.msra.mxu1 %v1495_v7  ;;  %1466 = vmatprep.subr.bf16.mxu0 %v1465_v48  ;;  %v380_v7 = vld [vmem:[#allocation5 + $0x7f8] sm:$0xff]  ;;  %v1483_v48 = vpack.c.bf16 %v330_v0, %v329_v3  ;;  %v1485_v50 = vpack.c.bf16 %v348_v46, %v347_v5  ;;  %1560 = vpow2.f32 %v121_v44  ;;  %p1615_p3 = scmp.lt.s32.totalorder %s975_s17, %s975_s17 }
 0x119   :  { %1498 = vmatprep.subr.bf16.mxu1 %v1497_v51  ;;  %v332_v51 = vld [vmem:[#allocation5 + $0x678] sm:$0xff]  ;;  %v1517_v52 = vpack.c.bf16 %v380_v7, %v379_v47 }
 0x11a   :  { %v1487_v12 = vpack.c.bf16 %v332_v51, %v331_v8 }
 0x11b   :  { %1468 = vmatpush3.bf16.msra.mxu0 %v1467_v56 }
 0x11c   :  { %1500 = vmatpush3.bf16.msra.mxu1 %v1499_v57  ;;  %1470 = vmatprep.subr.bf16.mxu0 %v1469_v58  ;;  %v1642_v58 = vmov 3  }
 0x11d   :  { %1502 = vmatprep.subr.bf16.mxu1 %v1501_v4  ;;  %1529 = vset.pattern.permute.xlu0 %v1642_v58 }
 0x11f   :  { %1472 = vmatpush3.bf16.msra.mxu0 %v1471_v6 }
 0x120   :  { %1504 = vmatpush3.bf16.msra.mxu1 %v1503_v10  ;;  %1474 = vmatprep.subr.bf16.mxu0 %v1473_v14 }
 0x121   :  { %1506 = vmatprep.subr.bf16.mxu1 %v1505_v19  ;;  %v1559_v56 = vpop.eup %1558 }
 0x122   :  { %v1561_v57 = vpop.eup %1560 }
 0x123   :  { %1476 = vmatpush3.bf16.msra.mxu0 %v1475_v13 }
 0x124   :  { %1508 = vmatpush3.bf16.msra.mxu1 %v1507_v27  ;;  %1478 = vmatprep.subr.bf16.mxu0 %v1477_v28 }
 0x125   :  { %1510 = vmatprep.subr.bf16.mxu1 %v1509_v35 }
 0x127   :  { %1480 = vmatpush3.bf16.msra.mxu0 %v1479_v41  ;;  %v952_v41 = vld [vmem:[%s1794_s2] sm:$0xff]  ;;  %s1610_s2 = scalar_lea.vmem %s975_s17, 128 }
 0x128   :  { %1512 = vmatpush3.bf16.msra.mxu1 %v1511_v43  ;;  %1482 = vmatprep.subr.bf16.mxu0 %v1481_v1  ;;  %p1611_p2 = scmp.ne.s32.totalorder %s975_s17, %s1610_s2  ;;  %p1616_p4 = scmp.lt.s32.totalorder %s1610_s2, %s1610_s2 }
 0x129   :  { %1514 = vmatprep.subr.bf16.mxu1 %v1513_v33 }
 0x12a   :  { %p1617_p5 = por %p1616_p4, %p1615_p3 }
 0x12b   :  { %1484 = vmatpush3.bf16.msra.mxu0 %v1483_v48 }
 0x12c   :  { %1516 = vmatpush3.bf16.msra.mxu1 %v1515_v49  ;;  %1486 = vmatprep.subr.bf16.mxu0 %v1485_v50  ;;  %p1618_p6 = pnand %p1617_p5, %p1611_p2 }
 0x12d   :  { %1518 = vmatprep.subr.bf16.mxu1 %v1517_v52 }
 0x12f   :  { %1488 = vmatpush3.bf16.msra.mxu0 %v1487_v12 }
 0x130   :  { %1520 = vmatpush3.bf16.msra.mxu1 %v1519_v55 }
 0x132   :  { %866 = vmatmul.mubr.f32.vlgmr.msra.gmra.mrb[6].mxu0 %v1559_v56 }
 0x133   :  { %936 = vmatmul.mubr.f32.vlgmr.msra.gmra.mrb[6].mxu1 %v1561_v57 }
 0x1a5   :  { %v1017_v59 = vpop.f32.mrb[0].mxu0 }
 0x1a6   :  { %v1052_v60 = vpop.f32.mrb[0].mxu1  ;;  %v1018_v17 = vpop.f32.mrb[1].mxu0 }
 0x1a7   :  { %v1019_v4 = vadd.f32 %v1018_v17, %v1017_v59  ;;  %v1053_v61 = vpop.f32.mrb[1].mxu1 }
 0x1a8   :  { %v1054_v62 = vadd.f32 %v1053_v61, %v1052_v60 }
 0x1aa   :  { %v518_v63 = vadd.f32 %v1054_v62, %v1019_v4 }
 0x1c5   :  { %v1087_v21 = vpop.f32.mrb[2].mxu0 }
 0x1c6   :  { %v1122_v9 = vpop.f32.mrb[2].mxu1  ;;  %v1088_v6 = vpop.f32.mrb[3].mxu0 }
 0x1c7   :  { %v1089_v10 = vadd.f32 %v1088_v6, %v1087_v21  ;;  %v1123_v14 = vpop.f32.mrb[3].mxu1 }
 0x1c8   :  { %v1124_v15 = vadd.f32 %v1123_v14, %v1122_v9 }
 0x1c9   :  { %v588_v16 = vadd.f32 %v1089_v10, %v518_v63 }
 0x1cb   :  { %v658_v18 = vadd.f32 %v1124_v15, %v588_v16 }
 0x1e5   :  { %v1157_v19 = vpop.f32.mrb[4].mxu0 }
 0x1e6   :  { %v1192_v11 = vpop.f32.mrb[4].mxu1  ;;  %v1158_v20 = vpop.f32.mrb[5].mxu0 }
 0x1e7   :  { %v1159_v22 = vadd.f32 %v1158_v20, %v1157_v19  ;;  %v1193_v23 = vpop.f32.mrb[5].mxu1 }
 0x1e8   :  { %v1194_v24 = vadd.f32 %v1193_v23, %v1192_v11 }
 0x1e9   :  { %v728_v13 = vadd.f32 %v1159_v22, %v658_v18 }
 0x1eb   :  { %v798_v25 = vadd.f32 %v1194_v24, %v728_v13 }
 0x205   :  { %v1227_v26 = vpop.f32.mrb[6].mxu0 }
 0x206   :  { %v1262_v27 = vpop.f32.mrb[6].mxu1  ;;  %v1228_v28 = vpop.f32.mrb[7].mxu0 }
 0x207   :  { %v1229_v29 = vadd.f32 %v1228_v28, %v1227_v26  ;;  %v1263_v30 = vpop.f32.mrb[7].mxu1 }
 0x208   :  { %v1264_v31 = vadd.f32 %v1263_v30, %v1262_v27 }
 0x209   :  { %v868_v32 = vadd.f32 %v1229_v29, %v798_v25 }
 0x20b   :  { %v938_v34 = vadd.f32 %v1264_v31, %v868_v32 }
 0x20d   :  { %943 = vperm.xlu0 %1529, %v938_v34  }
 0x28c   :  { %v944_v35 = vpop.permute.xlu0 %943 }
 0x28d   :  { %1562 = vrcp.f32 %v944_v35 }
 0x297   :  { %v1563_v36 = vpop.eup %1562 }
 0x298   :  { %v947_v37 = vmul.f32 %v1563_v36, %v938_v34 }
 0x29a   :  { %v984_v39 = vadd.f32 -0.5, %v947_v37 }
 0x29c   :  { %v950_v40 = vsub.f32 %v984_v39, %v949_v38 }
 0x29e   :  { %v951_v42 = vmul.f32 %v950_v40, %v950_v40 }
 0x2a0   :  { %v953_v43 = vmul.f32 %v952_v41, %v951_v42 }
 0x2a2   :  { %v955_v1 = vsel %vm954_vm0, %v953_v43, 0.0 }
 0x2a3   :  { %956 = vadd.xlane.f32.xlu1 %v955_v1 }
 0x330   :  { %v957_v3 = vpop.xlane.xlu1 %956 }
 0x331   :  { %v958_v0 = vrot.slane %v957_v3, 4 }
 0x333   :  { %v959_v2 = vadd.f32 %v958_v0, %v957_v3 }
 0x335   :  { %v960_v44 = vrot.slane %v959_v2, 2 }
 0x337   :  { %v961_v33 = vadd.f32 %v960_v44, %v959_v2 }
 0x339   :  { %v962_v45 = vrot.slane %v961_v33, 1 }
 0x33b   :  { %v963_v5 = vadd.f32 %v962_v45, %v961_v33 }
 0x33d   :  { %1521 = vpush %v963_v5 }
 0x36e   :  { %s1522_s18 = spop %1521 }
 0x36f   :  { %v965_v46 = vstv %s1522_s18 }
 0x370   :  { %967 = vst [vmem:[#allocation7] sm:$0xff] %v965_v46 }
 0x371   :  { %1621 = shalt.err (!%p1618_p6)
}
 0x372   :  { %s1622_s21 = scalar_lea.hbm %s1796_s4, 128 }
 0x373   :  { %p1623_p7 = scmp.ne.s32.totalorder %s1796_s4, %s1622_s21  ;;  %p1626_p8 = scmp.lt.u32.totalorder %s1622_s21, %s1796_s4 }
 0x375   :  { %p1628_p9 = pnand %p1626_p8, %p1623_p7 }
 0x377   :  { %1631 = shalt.err (!%p1628_p9)
}
 0x378   :  { %977 = dma.vmem_to_hbm [thread:$0]  %s975_s17, 128, %s1796_s4, [#allocation4]  }
 0x379   :  { %1636 = dma.done.wait [#allocation4], 128  }
 0x37a   :  { %1637 = vsyncadd [#allocation4], 4294967168 }
 0x37b   :  { %981 = vsyncpa [#allocation3], 1 }
 0x37c   :  { %982 = vsyncpa [#allocation6], 1 }
 0x37d   :  { %983 = vsyncpa [#allocation4], 1 }

</bundles_post_ra>
